<compile_context>
chip_gen: v7x
topology: tpu7x:2x2x1
jax: 0.10.0
libtpu: 0.0.40
codegen_flags: <defaults>
</compile_context>

<pallas_src>
import functools

import jax
import jax.numpy as jnp
from jax.experimental import pallas as pl
from jax.experimental.pallas import tpu as pltpu


def _round_up(n, m):
    return ((n + m - 1) // m) * m


def _autoencoder_kernel(x_ref, w1_ref, b1_ref, w2_ref, b2_ref, out_ref):
    # ---- encoder: Linear + ReLU ----
    # bf16 operands on the MXU, f32 accumulation.
    x_bf = x_ref[...].astype(jnp.bfloat16)
    h = jnp.dot(x_bf, w1_ref[...], preferred_element_type=jnp.float32)
    h = jnp.maximum(h + b1_ref[...], 0.0)          # f32 bias + ReLU on the VPU

    # ---- decoder: Linear + Sigmoid ----
    y = jnp.dot(h.astype(jnp.bfloat16), w2_ref[...],
                preferred_element_type=jnp.float32)
    y = y + b2_ref[...]
    out_ref[...] = jax.nn.sigmoid(y).astype(out_ref.dtype)   # exp on the EUP


@functools.partial(jax.jit, static_argnames=("tile_b",))
def autoencoder_forward(x, w1, b1, w2, b2, *, tile_b=128):
    batch, in_dim = x.shape
    in_dim_w, hidden = w1.shape
    assert in_dim_w == in_dim, "w1 must be [in_dim, hidden]"

    # ---------------- parameter prep (plain JAX, outside the hot loop) -----
    # Zero-pad hidden to a multiple of 128: lane-dense h / b1 and a K-dense
    # second matmul. Padded columns/rows are zero so results are unchanged.
    hidden_p = _round_up(hidden, 128)
    if hidden_p != hidden:
        w1 = jnp.pad(w1, ((0, 0), (0, hidden_p - hidden)))
        b1 = jnp.pad(b1, ((0, 0), (0, hidden_p - hidden)))
        w2 = jnp.pad(w2, ((0, hidden_p - hidden), (0, 0)))

    # bf16 weights: native MXU dtype, halves weight DMA + VMEM footprint.
    w1_bf = w1.astype(jnp.bfloat16)
    w2_bf = w2.astype(jnp.bfloat16)
    b1_f32 = b1.astype(jnp.float32).reshape(1, hidden_p)
    b2_f32 = b2.astype(jnp.float32).reshape(1, in_dim)

    # Batch tiling: pad batch up to a multiple of tile_b (>= 8 rows / tile).
    tile_b = min(tile_b, _round_up(batch, 8))
    batch_p = _round_up(batch, tile_b)
    if batch_p != batch:
        x = jnp.pad(x, ((0, batch_p - batch), (0, 0)))
    grid = (batch_p // tile_b,)

    # ---------------- pallas_call ------------------------------------------
    # x / out move per grid step; weights & biases have a constant index_map
    # so they are loaded once and stay resident in VMEM.
    in_specs = [
        pl.BlockSpec((tile_b, in_dim), lambda i: (i, 0)),      # x tile
        pl.BlockSpec((in_dim, hidden_p), lambda i: (0, 0)),    # W1 (resident)
        pl.BlockSpec((1, hidden_p), lambda i: (0, 0)),         # b1 (resident)
        pl.BlockSpec((hidden_p, in_dim), lambda i: (0, 0)),    # W2 (resident)
        pl.BlockSpec((1, in_dim), lambda i: (0, 0)),           # b2 (resident)
    ]
    out_specs = pl.BlockSpec((tile_b, in_dim), lambda i: (i, 0))

    flops = 2 * batch_p * in_dim * hidden_p * 2           # two matmuls
    transcendentals = batch_p * in_dim                     # sigmoid exp
    bytes_accessed = (
        batch_p * in_dim * 4                               # x (f32 in)
        + batch_p * in_dim * 4                             # out (f32)
        + in_dim * hidden_p * 2 * 2                        # W1 + W2 (bf16)
        + (hidden_p + in_dim) * 4                          # biases (f32)
    )

    out_padded = pl.pallas_call(
        _autoencoder_kernel,
        out_shape=jax.ShapeDtypeStruct((batch_p, in_dim), x.dtype),
        grid=grid,
        in_specs=in_specs,
        out_specs=out_specs,
        cost_estimate=pl.CostEstimate(
            flops=flops,
            transcendentals=transcendentals,
            bytes_accessed=bytes_accessed,
        ),
        compiler_params=pltpu.CompilerParams(
            # Batch tiles are independent -> megacore sharding on v7x.
            dimension_semantics=("parallel",),
            # Sized for the smallest generation (v7x: 64 MiB phys / 32 scoped);
            # our working set (double-buffered tiles + resident weights) is
            # well under this.
            vmem_limit_bytes=32 * 1024 * 1024,
        ),
    )(x, w1_bf, b1_f32, w2_bf, b2_f32)

    return out_padded[:batch] if batch_p != batch else out_padded


def _reference(x, w1, b1, w2, b2):
    h = jnp.maximum(x @ w1 + b1, 0.0)
    return jax.nn.sigmoid(h @ w2 + b2)


if __name__ == "__main__":
    # Small flattened-image autoencoder: batch=200 (exercises both the batch
    # grid and the pad/slice path), in_dim=256 (e.g. 1x16x16 image flattened),
    # hidden=32 (padded to 128 inside the wrapper).
    batch, in_dim, hidden = 200, 256, 32

    key = jax.random.PRNGKey(0)
    kx, k1, k2, k3, k4 = jax.random.split(key, 5)

    x = jax.random.normal(kx, (batch, in_dim), dtype=jnp.float32)
    # Deterministic parameter init (synthetic weights, not a checkpoint).
    w1 = jax.random.normal(k1, (in_dim, hidden), dtype=jnp.float32) * 0.05
    b1 = jax.random.normal(k2, (1, hidden), dtype=jnp.float32) * 0.01
    w2 = jax.random.normal(k3, (hidden, in_dim), dtype=jnp.float32) * 0.05
    b2 = jax.random.normal(k4, (1, in_dim), dtype=jnp.float32) * 0.01

    out = autoencoder_forward(x, w1, b1, w2, b2)
    out = jax.block_until_ready(out)

    ref = _reference(x, w1, b1, w2, b2)
    assert out.shape == (batch, in_dim)
    # bf16 MXU operands vs. f32 reference -> looser tolerance than pure f32.
    assert jnp.allclose(out, ref, atol=2e-2, rtol=2e-2), "mismatch vs JAX reference"

    print("KERNEL_OK")
</pallas_src>

<mosaic_0001>
module attributes {stable_mosaic.version = 11 : i64} {
  func.func @_autoencoder_kernel(%arg0: i32, %arg1: memref<128x256xf32, #tpu.memory_space<vmem>>, %arg2: memref<256x128xbf16, #tpu.memory_space<vmem>>, %arg3: memref<1x128xf32, #tpu.memory_space<vmem>>, %arg4: memref<128x256xbf16, #tpu.memory_space<vmem>>, %arg5: memref<1x256xf32, #tpu.memory_space<vmem>>, %arg6: memref<128x256xf32, #tpu.memory_space<vmem>>) attributes {dimension_semantics = [#tpu.dimension_semantics<parallel>], iteration_bounds = array<i64: 2>, scalar_prefetch = 0 : i64, scratch_operands = 0 : i64, tpu.core_type = #tpu.core_type<tc>, window_params = [{transform_indices = @transform_0, window_bounds = array<i64: 128, 256>}, {pipeline_mode = #tpu.pipeline_mode<synchronous>, transform_indices = @transform_1, window_bounds = array<i64: 256, 128>}, {pipeline_mode = #tpu.pipeline_mode<synchronous>, transform_indices = @transform_2, window_bounds = array<i64: 1, 128>}, {pipeline_mode = #tpu.pipeline_mode<synchronous>, transform_indices = @transform_3, window_bounds = array<i64: 128, 256>}, {pipeline_mode = #tpu.pipeline_mode<synchronous>, transform_indices = @transform_4, window_bounds = array<i64: 1, 256>}, {transform_indices = @transform_5, window_bounds = array<i64: 128, 256>}]} {
    %c0 = arith.constant 0 : index
    %c0_0 = arith.constant 0 : index
    %0 = vector.load %arg1[%c0, %c0_0] : memref<128x256xf32, #tpu.memory_space<vmem>>, vector<128x256xf32>
    %1 = arith.truncf %0 : vector<128x256xf32> to vector<128x256xbf16>
    %c0_1 = arith.constant 0 : index
    %c0_2 = arith.constant 0 : index
    %2 = vector.load %arg2[%c0_1, %c0_2] : memref<256x128xbf16, #tpu.memory_space<vmem>>, vector<256x128xbf16>
    %cst = arith.constant dense<0.000000e+00> : vector<128x128xf32>
    %3 = tpu.matmul %1, %2, %cst {dimension_numbers = #tpu.dot_dimension_numbers<[1], [0], [0], [1], [0, 0, 1, 1], [], []>} : vector<128x256xbf16>, vector<256x128xbf16>, vector<128x128xf32> -> vector<128x128xf32>
    %c0_3 = arith.constant 0 : index
    %c0_4 = arith.constant 0 : index
    %4 = vector.load %arg3[%c0_3, %c0_4] : memref<1x128xf32, #tpu.memory_space<vmem>>, vector<1x128xf32>
    %5 = vector.broadcast %4 : vector<1x128xf32> to vector<128x128xf32>
    %6 = arith.addf %3, %5 : vector<128x128xf32>
    %cst_5 = arith.constant 0.000000e+00 : f32
    %7 = vector.broadcast %cst_5 : f32 to vector<128x128xf32>
    %8 = arith.maximumf %6, %7 : vector<128x128xf32>
    %9 = arith.truncf %8 : vector<128x128xf32> to vector<128x128xbf16>
    %c0_6 = arith.constant 0 : index
    %c0_7 = arith.constant 0 : index
    %10 = vector.load %arg4[%c0_6, %c0_7] : memref<128x256xbf16, #tpu.memory_space<vmem>>, vector<128x256xbf16>
    %cst_8 = arith.constant dense<0.000000e+00> : vector<128x256xf32>
    %11 = tpu.matmul %9, %10, %cst_8 {dimension_numbers = #tpu.dot_dimension_numbers<[1], [0], [0], [1], [0, 0, 1, 1], [], []>} : vector<128x128xbf16>, vector<128x256xbf16>, vector<128x256xf32> -> vector<128x256xf32>
    %c0_9 = arith.constant 0 : index
    %c0_10 = arith.constant 0 : index
    %12 = vector.load %arg5[%c0_9, %c0_10] : memref<1x256xf32, #tpu.memory_space<vmem>>, vector<1x256xf32>
    %13 = vector.broadcast %12 : vector<1x256xf32> to vector<128x256xf32>
    %14 = arith.addf %11, %13 : vector<128x256xf32>
    %15 = arith.negf %14 : vector<128x256xf32>
    %16 = math.exp %15 : vector<128x256xf32>
    %cst_11 = arith.constant 1.000000e+00 : f32
    %17 = vector.broadcast %cst_11 : f32 to vector<128x256xf32>
    %18 = arith.addf %17, %16 : vector<128x256xf32>
    %19 = arith.divf %17, %18 : vector<128x256xf32>
    %c0_12 = arith.constant 0 : index
    %c0_13 = arith.constant 0 : index
    %20 = vector.load %arg6[%c0_12, %c0_13] : memref<128x256xf32, #tpu.memory_space<vmem>>, vector<128x256xf32>
    tpu.vector_store %arg6[%c0_12, %c0_13], %19 {strides = array<i32>} : memref<128x256xf32, #tpu.memory_space<vmem>>, vector<128x256xf32>,
    return
  }
  func.func @transform_0(%arg0: i32) -> (i32, i32) {
    %c0_i32 = arith.constant 0 : i32
    %c0_i32_0 = arith.constant 0 : i32
    return %arg0, %c0_i32 : i32, i32
  }
  func.func @transform_1(%arg0: i32) -> (i32, i32) {
    %c0_i32 = arith.constant 0 : i32
    %c0_i32_0 = arith.constant 0 : i32
    %c0_i32_1 = arith.constant 0 : i32
    return %c0_i32, %c0_i32_0 : i32, i32
  }
  func.func @transform_2(%arg0: i32) -> (i32, i32) {
    %c0_i32 = arith.constant 0 : i32
    %c0_i32_0 = arith.constant 0 : i32
    %c0_i32_1 = arith.constant 0 : i32
    return %c0_i32, %c0_i32_0 : i32, i32
  }
  func.func @transform_3(%arg0: i32) -> (i32, i32) {
    %c0_i32 = arith.constant 0 : i32
    %c0_i32_0 = arith.constant 0 : i32
    %c0_i32_1 = arith.constant 0 : i32
    return %c0_i32, %c0_i32_0 : i32, i32
  }
  func.func @transform_4(%arg0: i32) -> (i32, i32) {
    %c0_i32 = arith.constant 0 : i32
    %c0_i32_0 = arith.constant 0 : i32
    %c0_i32_1 = arith.constant 0 : i32
    return %c0_i32, %c0_i32_0 : i32, i32
  }
  func.func @transform_5(%arg0: i32) -> (i32, i32) {
    %c0_i32 = arith.constant 0 : i32
    %c0_i32_0 = arith.constant 0 : i32
    return %arg0, %c0_i32 : i32, i32
  }
}

</mosaic_0001>

<bundles_post_ra>
// kernel: autoencoder_forward.1
= control target key start
LH: loop header
LB: loop body
LE: loop exit
PB: predicated region body
PF: predicated region fallthrough
CT: control target
= control target key end

     0   :  { %s1401_s18 = smov 0   ;;  %s1657_s0 = inlined_call_operand.vmem [shape: f32[256,256], index: 0, kind: input, shape index: {}]   ;;  %s1658_s1 = inlined_call_operand.vmem [shape: bf16[256,128], index: 1, kind: input, shape index: {}]   ;;  %s1659_s2 = inlined_call_operand.vmem [shape: f32[1,128], index: 2, kind: input, shape index: {}]   ;;  %s1660_s3 = inlined_call_operand.vmem [shape: bf16[128,256], index: 3, kind: input, shape index: {}]   ;;  %s1661_s4 = inlined_call_operand.vmem [shape: f32[1,256], index: 4, kind: input, shape index: {}]   ;;  %s1662_s5 = inlined_call_operand.vmem [shape: f32[256,256], index: 5, kind: output, shape index: {}]  }
   0x1 LB: > { %s1041_s19 = sadd.s32 4294967295, %s1368_s18   ;;  %p1045_p0 = scmp.ge.s32.totalorder %s1368_s18, 1  ;;  %s1368_s18 = sphi %s1401_s18, %s15_s18  }
   0x2   : > { %p189_p1 = scmp.lt.s32.totalorder %s1368_s18, 3 }
   0x4   : > { %p190_p2 = pnand %p1045_p0, %p189_p1 }
   0x5   : > { %v1194_v0 = vld [vmem:[%s1658_s1 + $0x40] sm:$0xff] (!%p190_p2)   ;;  %s1046_s22 = sshll.u32 (!%p190_p2), %s1041_s19, 4  ;;  %v1196_v2 = vld [vmem:[%s1658_s1 + $0x48] sm:$0xff] (!%p190_p2)   ;;  %v1198_v4 = vld [vmem:[%s1658_s1 + $0x50] sm:$0xff] (!%p190_p2)  }
   0x6   : > { %193 = sbr.rel (%p190_p2) target bundleno = 564 (0x234), region = 40  ;;  %v1195_v1 = vld [vmem:[%s1658_s1] sm:$0xff] (!%p190_p2)   ;;  %1121 = vmatprep.subr.bf16.mxu0 (!%p190_p2), %v1194_v0  ;;  %p220_p3 = scmp.lt.s32.totalorder (!%p190_p2), %s1046_s22, 31  ;;  %v1197_v3 = vld [vmem:[%s1658_s1 + $0x8] sm:$0xff] (!%p190_p2)   ;;  %v1199_v5 = vld [vmem:[%s1658_s1 + $0x10] sm:$0xff] (!%p190_p2)  }
   0x7   : > { %1122 = vmatpush3.bf16.msra.mxu0 (!%p190_p2), %v1195_v1  ;;  %v1200_v6 = vld [vmem:[%s1658_s1 + $0x58] sm:$0xff] (!%p190_p2)   ;;  %v1202_v8 = vld [vmem:[%s1658_s1 + $0x60] sm:$0xff] (!%p190_p2)   ;;  %v1204_v10 = vld [vmem:[%s1658_s1 + $0x68] sm:$0xff] (!%p190_p2)  }
   0x8   : > { %1123 = vmatprep.subr.bf16.mxu0 (!%p190_p2), %v1196_v2  ;;  %v1201_v7 = vld [vmem:[%s1658_s1 + $0x18] sm:$0xff] (!%p190_p2)   ;;  %v1203_v9 = vld [vmem:[%s1658_s1 + $0x20] sm:$0xff] (!%p190_p2)   ;;  %v1205_v14 = vld [vmem:[%s1658_s1 + $0x28] sm:$0xff] (!%p190_p2)  }
   0x9   : > { %v1206_v15 = vld [vmem:[%s1658_s1 + $0x70] sm:$0xff] (!%p190_p2)   ;;  %v1208_v17 = vld [vmem:[%s1658_s1 + $0x78] sm:$0xff] (!%p190_p2)   ;;  %v1210_v23 = vld [vmem:[%s1660_s3 + $0x4] ss:$8 sps:$4 sm:$0xff] (!%p190_p2)  }
   0xa   : > { %v1207_v16 = vld [vmem:[%s1658_s1 + $0x30] sm:$0xff] (!%p190_p2)   ;;  %v1209_v18 = vld [vmem:[%s1658_s1 + $0x38] sm:$0xff] (!%p190_p2)   ;;  %v1212_v24 = vld [vmem:[%s1660_s3] ss:$8 sps:$4 sm:$0xff] (!%p190_p2)   ;;  %646 = vmatprep.subr.bf16.mxu1 (!%p190_p2), %v1210_v23 }
   0xb   : > { %1124 = vmatpush3.bf16.msra.mxu0 (!%p190_p2), %v1197_v3  ;;  %v1213_v25 = vld [vmem:[%s1660_s3 + $0x14] ss:$8 sps:$4 sm:$0xff] (!%p190_p2)   ;;  %647 = vmatpush1.bf16.msra.mxu1 (!%p190_p2), %v1212_v24  ;;  %v1215_v27 = vld [vmem:[%s1660_s3 + $0x10] ss:$8 sps:$4 sm:$0xff] (!%p190_p2)   ;;  %v1216_v29 = vld [vmem:[%s1660_s3 + $0x24] ss:$8 sps:$4 sm:$0xff] (!%p190_p2)  }
   0xc   : > { %1125 = vmatprep.subr.bf16.mxu0 (!%p190_p2), %v1198_v4  ;;  %648 = vmatprep.subr.bf16.mxu1 (!%p190_p2), %v1213_v25  ;;  %v1218_v31 = vld [vmem:[%s1660_s3 + $0x20] ss:$8 sps:$4 sm:$0xff] (!%p190_p2)   ;;  %v1219_v33 = vld [vmem:[%s1660_s3 + $0x34] ss:$8 sps:$4 sm:$0xff] (!%p190_p2)   ;;  %v1221_v37 = vld [vmem:[%s1660_s3 + $0x30] ss:$8 sps:$4 sm:$0xff] (!%p190_p2)  }
   0xd   : > { %s1664_s22 = smov (!%p220_p3, %s1046_s22), 31  ;;  %v1222_v39 = vld [vmem:[%s1660_s3 + $0x44] ss:$8 sps:$4 sm:$0xff]   ;;  %v1224_v40 = vld [vmem:[%s1660_s3 + $0x40] ss:$8 sps:$4 sm:$0xff]  }
   0xe   : > { %s1119_s10 = sshll.u32 %s1664_s22, 4 }
   0xf   : > { %1126 = vmatpush3.bf16.msra.mxu0 %v1199_v5  ;;  %s1444_s17 = scalar_lea.vmem %s1657_s0, %s1119_s10  ;;  %649 = vmatpush1.bf16.msra.mxu1 %v1215_v27  ;;  %s1601_s29 = scalar_lea.vmem %s1662_s5, %s1119_s10 }
  0x10   : > { %1127 = vmatprep.subr.bf16.mxu0 %v1200_v6  ;;  %v235_v11 = vld [vmem:[%s1444_s17 + $0x8] sm:$0xff]  ;;  %v237_v12 = vld [vmem:[%s1444_s17 + $0x18] sm:$0xff]  ;;  %v234_v19 = vld [vmem:[%s1444_s17] sm:$0xff]  ;;  %650 = vmatprep.subr.bf16.mxu1 %v1216_v29 }
  0x11   : > { %v267_v13 = vpack.c.bf16 %v237_v12, %v235_v11  ;;  %v236_v20 = vld [vmem:[%s1444_s17 + $0x10] sm:$0xff]  ;;  %v239_v21 = vld [vmem:[%s1444_s17 + $0x28] sm:$0xff]  ;;  %v241_v22 = vld [vmem:[%s1444_s17 + $0x38] sm:$0xff] }
  0x12   : > { %v266_v26 = vpack.c.bf16 %v236_v20, %v234_v19  ;;  %v269_v28 = vpack.c.bf16 %v241_v22, %v239_v21  ;;  %v238_v30 = vld [vmem:[%s1444_s17 + $0x20] sm:$0xff]  ;;  %v240_v32 = vld [vmem:[%s1444_s17 + $0x30] sm:$0xff]  ;;  %v243_v34 = vld [vmem:[%s1444_s17 + $0x48] sm:$0xff] }
  0x13   : > { %1128 = vmatpush3.bf16.msra.mxu0 %v1201_v7  ;;  %449 = vmatprep.mubr.bf16.mxu0 %v267_v13  ;;  %v245_v35 = vld [vmem:[%s1444_s17 + $0x58] sm:$0xff]  ;;  %v268_v36 = vpack.c.bf16 %v240_v32, %v238_v30  ;;  %v242_v41 = vld [vmem:[%s1444_s17 + $0x40] sm:$0xff]  ;;  %v244_v42 = vld [vmem:[%s1444_s17 + $0x50] sm:$0xff] }
  0x14   : > { %1129 = vmatprep.subr.bf16.mxu0 %v1202_v8  ;;  %651 = vmatpush1.bf16.msra.mxu1 %v1218_v31  ;;  %v271_v38 = vpack.c.bf16 %v245_v35, %v243_v34  ;;  %v247_v43 = vld [vmem:[%s1444_s17 + $0x68] sm:$0xff]  ;;  %v249_v44 = vld [vmem:[%s1444_s17 + $0x78] sm:$0xff]  ;;  %v270_v45 = vpack.c.bf16 %v244_v42, %v242_v41  ;;  %v246_v47 = vld [vmem:[%s1444_s17 + $0x60] sm:$0xff] }
  0x15   : > { %652 = vmatprep.subr.bf16.mxu1 %v1219_v33  ;;  %v273_v46 = vpack.c.bf16 %v249_v44, %v247_v43  ;;  %v248_v48 = vld [vmem:[%s1444_s17 + $0x70] sm:$0xff]  ;;  %v251_v49 = vld [vmem:[%s1444_s17 + $0x88] sm:$0xff]  ;;  %v253_v50 = vld [vmem:[%s1444_s17 + $0x98] sm:$0xff] }
  0x16   : > { %v272_v51 = vpack.c.bf16 %v248_v48, %v246_v47  ;;  %v275_v52 = vpack.c.bf16 %v253_v50, %v251_v49  ;;  %v250_v53 = vld [vmem:[%s1444_s17 + $0x80] sm:$0xff]  ;;  %v252_v54 = vld [vmem:[%s1444_s17 + $0x90] sm:$0xff]  ;;  %v255_v55 = vld [vmem:[%s1444_s17 + $0xa8] sm:$0xff] }
  0x17   : > { %1130 = vmatpush3.bf16.msra.mxu0 %v1203_v9  ;;  %v257_v56 = vld [vmem:[%s1444_s17 + $0xb8] sm:$0xff]  ;;  %v274_v57 = vpack.c.bf16 %v252_v54, %v250_v53  ;;  %v254_v59 = vld [vmem:[%s1444_s17 + $0xa0] sm:$0xff]  ;;  %v256_v60 = vld [vmem:[%s1444_s17 + $0xb0] sm:$0xff] }
  0x18   : > { %1131 = vmatprep.subr.bf16.mxu0 %v1204_v10  ;;  %653 = vmatpush1.bf16.msra.mxu1 %v1221_v37  ;;  %v277_v58 = vpack.c.bf16 %v257_v56, %v255_v55  ;;  %v259_v61 = vld [vmem:[%s1444_s17 + $0xc8] sm:$0xff]  ;;  %v261_v62 = vld [vmem:[%s1444_s17 + $0xd8] sm:$0xff]  ;;  %v276_v63 = vpack.c.bf16 %v256_v60, %v254_v59  ;;  %v258_v1 = vld [vmem:[%s1444_s17 + $0xc0] sm:$0xff] }
  0x19   : > { %654 = vmatprep.subr.bf16.mxu1 %v1222_v39  ;;  %v279_v0 = vpack.c.bf16 %v261_v62, %v259_v61  ;;  %v260_v2 = vld [vmem:[%s1444_s17 + $0xd0] sm:$0xff]  ;;  %v263_v3 = vld [vmem:[%s1444_s17 + $0xe8] sm:$0xff]  ;;  %v265_v4 = vld [vmem:[%s1444_s17 + $0xf8] sm:$0xff] }
  0x1a   : > { %v278_v5 = vpack.c.bf16 %v260_v2, %v258_v1  ;;  %v281_v6 = vpack.c.bf16 %v265_v4, %v263_v3  ;;  %v262_v7 = vld [vmem:[%s1444_s17 + $0xe0] sm:$0xff]  ;;  %v264_v8 = vld [vmem:[%s1444_s17 + $0xf0] sm:$0xff] }
  0x1b   : > { %1132 = vmatpush3.bf16.msra.mxu0 %v1205_v14  ;;  %v280_v9 = vpack.c.bf16 %v264_v8, %v262_v7  ;;  %v1225_v10 = vld [vmem:[%s1660_s3 + $0x54] ss:$8 sps:$4 sm:$0xff]   ;;  %v1227_v11 = vld [vmem:[%s1660_s3 + $0x50] ss:$8 sps:$4 sm:$0xff]   ;;  %v1228_v12 = vld [vmem:[%s1660_s3 + $0x64] ss:$8 sps:$4 sm:$0xff]  }
  0x1c   : > { %1133 = vmatprep.subr.bf16.mxu0 %v1206_v15  ;;  %655 = vmatpush1.bf16.msra.mxu1 %v1224_v40  ;;  %v1230_v13 = vld [vmem:[%s1660_s3 + $0x60] ss:$8 sps:$4 sm:$0xff]   ;;  %v1231_v14 = vld [vmem:[%s1660_s3 + $0x74] ss:$8 sps:$4 sm:$0xff]   ;;  %v1233_v15 = vld [vmem:[%s1660_s3 + $0x70] ss:$8 sps:$4 sm:$0xff]  }
  0x1d   : > { %656 = vmatprep.subr.bf16.mxu1 %v1225_v10 }
  0x1f   : > { %1134 = vmatpush3.bf16.msra.mxu0 %v1207_v16  ;;  %v1370_v16 = vmov 0  }
  0x20   : > { %1135 = vmatprep.subr.bf16.mxu0 %v1208_v17  ;;  %657 = vmatpush1.bf16.msra.mxu1 %v1227_v11 }
  0x21   : > { %658 = vmatprep.subr.bf16.mxu1 %v1228_v12  ;;  %678 = vmatprep.mubr.bf16.mxu1 %v1370_v16 }
  0x23   : > { %1136 = vmatpush3.bf16.msra.mxu0 %v1209_v18  ;;  %v1551_v18 = vld [vmem:[%s1659_s2] ss:$0 sm:$0xff] }
  0x24   : > { %659 = vmatpush1.bf16.msra.mxu1 %v1230_v13 }
  0x25   : > { %660 = vmatprep.subr.bf16.mxu1 %v1231_v14 }
  0x26   : > { %450 = vmatmul.mubr.bf16.vlgmr.msra.gmra.mrb[0].mxu0 %v266_v26 }
  0x27   : > { %457 = vmatprep.mubr.bf16.mxu0 %v269_v28 }
  0x28   : > { %661 = vmatpush1.bf16.msra.mxu1 %v1233_v15 }
  0x2e   : > { %458 = vmatmul.mubr.bf16.gmra.mrb[4].mxu0 %v268_v36 }
  0x2f   : > { %465 = vmatprep.mubr.bf16.mxu0 %v271_v38 }
  0x36   : > { %466 = vmatmul.mubr.bf16.gmra.mrb[8].mxu0 %v270_v45 }
  0x37   : > { %473 = vmatprep.mubr.bf16.mxu0 %v273_v46 }
  0x3e   : > { %474 = vmatmul.mubr.bf16.gmra.mrb[12].mxu0 %v272_v51 }
  0x3f   : > { %481 = vmatprep.mubr.bf16.mxu0 %v275_v52 }
  0x46   : > { %482 = vmatmul.mubr.bf16.gmra.mrb[16].mxu0 %v274_v57 }
  0x47   : > { %489 = vmatprep.mubr.bf16.mxu0 %v277_v58 }
  0x4e   : > { %490 = vmatmul.mubr.bf16.gmra.mrb[20].mxu0 %v276_v63 }
  0x4f   : > { %497 = vmatprep.mubr.bf16.mxu0 %v279_v0 }
  0x56   : > { %498 = vmatmul.mubr.bf16.gmra.mrb[24].mxu0 %v278_v5 }
  0x57   : > { %505 = vmatprep.mubr.bf16.mxu0 %v281_v6 }
  0x5e   : > { %506 = vmatmul.mubr.bf16.gmra.mrb[28].mxu0 %v280_v9 }
  0xf9   : > { %v1137_v17 = vpop.f32.mrb[0].mxu0 }
  0xfa   : > { %v1138_v19 = vpop.f32.mrb[1].mxu0 }
  0xfb   : > { %v1139_v20 = vadd.f32 %v1138_v19, %v1137_v17  ;;  %v1140_v21 = vpop.f32.mrb[2].mxu0 }
  0xfc   : > { %v1141_v22 = vpop.f32.mrb[3].mxu0 }
  0xfd   : > { %v452_v23 = vadd.f32 %v1139_v20, %v1551_v18  ;;  %v1142_v24 = vadd.f32 %v1141_v22, %v1140_v21 }
  0xff   : > { %v455_v25 = vadd.f32 %v1142_v24, %v1551_v18  ;;  %v514_v26 = vmax.f32 %v452_v23, 0.0 }
 0x101   : > { %v515_v27 = vmax.f32 %v455_v25, 0.0  ;;  %v1143_v28 = vpop.f32.mrb[4].mxu0 }
 0x102   : > { %v1144_v29 = vpop.f32.mrb[5].mxu0 }
 0x103   : > { %v1145_v30 = vadd.f32 %v1144_v29, %v1143_v28  ;;  %v1146_v31 = vpop.f32.mrb[6].mxu0  ;;  %v530_v32 = vpack.c.bf16 %v515_v27, %v514_v26 }
 0x104   : > { %v1147_v33 = vpop.f32.mrb[7].mxu0 }
 0x105   : > { %v460_v34 = vadd.f32 %v1145_v30, %v1551_v18  ;;  %v1148_v35 = vadd.f32 %v1147_v33, %v1146_v31  ;;  %679 = vmatmul.mubr.bf16.vlgmr.msra.gmra.mrb[0].mxu1 %v530_v32 }
 0x106   : > { %688 = vmatprep.mubr.bf16.mxu1 %v1370_v16 }
 0x107   : > { %v463_v36 = vadd.f32 %v1148_v35, %v1551_v18  ;;  %v516_v37 = vmax.f32 %v460_v34, 0.0 }
 0x109   : > { %v517_v38 = vmax.f32 %v463_v36, 0.0  ;;  %v1149_v39 = vpop.f32.mrb[8].mxu0 }
 0x10a   : > { %v1150_v40 = vpop.f32.mrb[9].mxu0 }
 0x10b   : > { %v1151_v41 = vadd.f32 %v1150_v40, %v1149_v39  ;;  %v1152_v42 = vpop.f32.mrb[10].mxu0  ;;  %v531_v43 = vpack.c.bf16 %v517_v38, %v516_v37 }
 0x10c   : > { %v1153_v44 = vpop.f32.mrb[11].mxu0 }
 0x10d   : > { %v468_v45 = vadd.f32 %v1151_v41, %v1551_v18  ;;  %v1154_v46 = vadd.f32 %v1153_v44, %v1152_v42  ;;  %689 = vmatmul.mubr.bf16.gmra.mrb[4].mxu1 %v531_v43  ;;  %v556_v44 = vlaneseq }
 0x10e   : > { %698 = vmatprep.mubr.bf16.mxu1 %v1370_v16 }
 0x10f   : > { %v471_v47 = vadd.f32 %v1154_v46, %v1551_v18  ;;  %v518_v48 = vmax.f32 %v468_v45, 0.0  ;;  %v557_v45 = vshrl.u32 %v556_v44, 7 }
 0x111   : > { %v519_v49 = vmax.f32 %v471_v47, 0.0  ;;  %v1155_v50 = vpop.f32.mrb[12].mxu0  ;;  %v558_v46 = vsub.s32 0, %v557_v45  ;;  %v554_v47 = vld [vmem:[%s1661_s4] sm:$0x3] }
 0x112   : > { %v1156_v51 = vpop.f32.mrb[13].mxu0 }
 0x113   : > { %v1157_v52 = vadd.f32 %v1156_v51, %v1155_v50  ;;  %v1158_v53 = vpop.f32.mrb[14].mxu0  ;;  %v532_v54 = vpack.c.bf16 %v519_v49, %v518_v48  ;;  %v562_v48 = vsub.s32 1, %v557_v45  ;;  %v1579_v49 = vrot.slane %v554_v47, %v558_v46 }
 0x114   : > { %v1159_v55 = vpop.f32.mrb[15].mxu0 }
 0x115   : > { %v476_v56 = vadd.f32 %v1157_v52, %v1551_v18  ;;  %v1160_v57 = vadd.f32 %v1159_v55, %v1158_v53  ;;  %699 = vmatmul.mubr.bf16.gmra.mrb[8].mxu1 %v532_v54  ;;  %v1581_v50 = vrot.slane %v554_v47, %v562_v48 }
 0x116   : > { %708 = vmatprep.mubr.bf16.mxu1 %v1370_v16 }
 0x117   : > { %v479_v58 = vadd.f32 %v1160_v57, %v1551_v18  ;;  %v520_v59 = vmax.f32 %v476_v56, 0.0 }
 0x119   : > { %v521_v60 = vmax.f32 %v479_v58, 0.0  ;;  %v1161_v61 = vpop.f32.mrb[16].mxu0 }
 0x11a   : > { %v1162_v62 = vpop.f32.mrb[17].mxu0 }
 0x11b   : > { %v1163_v63 = vadd.f32 %v1162_v62, %v1161_v61  ;;  %v1164_v0 = vpop.f32.mrb[18].mxu0  ;;  %v533_v1 = vpack.c.bf16 %v521_v60, %v520_v59 }
 0x11c   : > { %v1165_v2 = vpop.f32.mrb[19].mxu0 }
 0x11d   : > { %v484_v3 = vadd.f32 %v1163_v63, %v1551_v18  ;;  %v1166_v4 = vadd.f32 %v1165_v2, %v1164_v0  ;;  %709 = vmatmul.mubr.bf16.gmra.mrb[12].mxu1 %v533_v1 }
 0x11e   : > { %718 = vmatprep.mubr.bf16.mxu1 %v1370_v16 }
 0x11f   : > { %v487_v5 = vadd.f32 %v1166_v4, %v1551_v18  ;;  %v522_v6 = vmax.f32 %v484_v3, 0.0 }
 0x121   : > { %v523_v7 = vmax.f32 %v487_v5, 0.0  ;;  %v1167_v8 = vpop.f32.mrb[20].mxu0 }
 0x122   : > { %v1168_v9 = vpop.f32.mrb[21].mxu0 }
 0x123   : > { %v1169_v10 = vadd.f32 %v1168_v9, %v1167_v8  ;;  %v1170_v11 = vpop.f32.mrb[22].mxu0  ;;  %v534_v12 = vpack.c.bf16 %v523_v7, %v522_v6 }
 0x124   : > { %v1171_v13 = vpop.f32.mrb[23].mxu0 }
 0x125   : > { %v492_v14 = vadd.f32 %v1169_v10, %v1551_v18  ;;  %v1172_v15 = vadd.f32 %v1171_v13, %v1170_v11  ;;  %719 = vmatmul.mubr.bf16.gmra.mrb[16].mxu1 %v534_v12 }
 0x126   : > { %728 = vmatprep.mubr.bf16.mxu1 %v1370_v16 }
 0x127   : > { %v495_v17 = vadd.f32 %v1172_v15, %v1551_v18  ;;  %v524_v19 = vmax.f32 %v492_v14, 0.0 }
 0x129   : > { %v525_v20 = vmax.f32 %v495_v17, 0.0  ;;  %v1173_v21 = vpop.f32.mrb[24].mxu0 }
 0x12a   : > { %v1174_v22 = vpop.f32.mrb[25].mxu0 }
 0x12b   : > { %v1175_v23 = vadd.f32 %v1174_v22, %v1173_v21  ;;  %v1176_v24 = vpop.f32.mrb[26].mxu0  ;;  %v535_v25 = vpack.c.bf16 %v525_v20, %v524_v19 }
 0x12c   : > { %v1177_v26 = vpop.f32.mrb[27].mxu0 }
 0x12d   : > { %v500_v27 = vadd.f32 %v1175_v23, %v1551_v18  ;;  %v1178_v28 = vadd.f32 %v1177_v26, %v1176_v24  ;;  %729 = vmatmul.mubr.bf16.gmra.mrb[20].mxu1 %v535_v25 }
 0x12e   : > { %738 = vmatprep.mubr.bf16.mxu1 %v1370_v16 }
 0x12f   : > { %v503_v29 = vadd.f32 %v1178_v28, %v1551_v18  ;;  %v526_v30 = vmax.f32 %v500_v27, 0.0 }
 0x131   : > { %v527_v31 = vmax.f32 %v503_v29, 0.0  ;;  %v1179_v32 = vpop.f32.mrb[28].mxu0 }
 0x132   : > { %v1180_v33 = vpop.f32.mrb[29].mxu0 }
 0x133   : > { %v1181_v34 = vadd.f32 %v1180_v33, %v1179_v32  ;;  %v1182_v35 = vpop.f32.mrb[30].mxu0  ;;  %v536_v36 = vpack.c.bf16 %v527_v31, %v526_v30 }
 0x134   : > { %v1183_v37 = vpop.f32.mrb[31].mxu0 }
 0x135   : > { %v508_v38 = vadd.f32 %v1181_v34, %v1551_v18  ;;  %v1184_v39 = vadd.f32 %v1183_v37, %v1182_v35  ;;  %739 = vmatmul.mubr.bf16.gmra.mrb[24].mxu1 %v536_v36 }
 0x136   : > { %748 = vmatprep.mubr.bf16.mxu1 %v1370_v16 }
 0x137   : > { %v511_v40 = vadd.f32 %v1184_v39, %v1551_v18  ;;  %v528_v41 = vmax.f32 %v508_v38, 0.0 }
 0x139   : > { %v529_v42 = vmax.f32 %v511_v40, 0.0 }
 0x13b   : > { %v537_v43 = vpack.c.bf16 %v529_v42, %v528_v41 }
 0x13d   : > { %749 = vmatmul.mubr.bf16.gmra.mrb[28].mxu1 %v537_v43 }
 0x1d8   : > { %v680_v51 = vpop.f32.mrb[0].mxu1 }
 0x1d9   : > { %v681_v16 = vadd.f32 %v680_v51, %v1579_v49  ;;  %v682_v18 = vpop.f32.mrb[1].mxu1 }
 0x1da   : > { %v683_v52 = vadd.f32 %v682_v18, %v1581_v50  ;;  %v684_v53 = vpop.f32.mrb[2].mxu1 }
 0x1db   : > { %v1085_v54 = vmul.f32 -1.442695, %v681_v16  ;;  %v685_v55 = vadd.f32 %v684_v53, %v1579_v49  ;;  %v686_v56 = vpop.f32.mrb[3].mxu1 }
 0x1dc   : > { %v1086_v57 = vmul.f32 -1.442695, %v683_v52  ;;  %v687_v58 = vadd.f32 %v686_v56, %v1581_v50 }
 0x1dd   : > { %1234 = vpow2.f32 %v1085_v54  ;;  %v1087_v59 = vmul.f32 -1.442695, %v685_v55 }
 0x1de   : > { %1236 = vpow2.f32 %v1086_v57  ;;  %v1088_v60 = vmul.f32 -1.442695, %v687_v58 }
 0x1df   : > { %1238 = vpow2.f32 %v1087_v59 }
 0x1e0   : > { %1240 = vpow2.f32 %v1088_v60  ;;  %v690_v61 = vpop.f32.mrb[4].mxu1 }
 0x1e1   : > { %v691_v62 = vadd.f32 %v690_v61, %v1579_v49  ;;  %v692_v63 = vpop.f32.mrb[5].mxu1 }
 0x1e2   : > { %v693_v0 = vadd.f32 %v692_v63, %v1581_v50  ;;  %v694_v1 = vpop.f32.mrb[6].mxu1 }
 0x1e3   : > { %v1089_v2 = vmul.f32 -1.442695, %v691_v62  ;;  %v695_v3 = vadd.f32 %v694_v1, %v1579_v49  ;;  %v696_v4 = vpop.f32.mrb[7].mxu1 }
 0x1e4   : > { %v1090_v5 = vmul.f32 -1.442695, %v693_v0  ;;  %v697_v6 = vadd.f32 %v696_v4, %v1581_v50 }
 0x1e5   : > { %1242 = vpow2.f32 %v1089_v2  ;;  %v1091_v7 = vmul.f32 -1.442695, %v695_v3 }
 0x1e6   : > { %1244 = vpow2.f32 %v1090_v5  ;;  %v1092_v8 = vmul.f32 -1.442695, %v697_v6 }
 0x1e7   : > { %v1235_v9 = vpop.eup %1234  ;;  %1246 = vpow2.f32 %v1091_v7 }
 0x1e8   : > { %v1237_v10 = vpop.eup %1236  ;;  %v855_v11 = vadd.f32 1.0, %v1235_v9  ;;  %1248 = vpow2.f32 %v1092_v8  ;;  %v700_v12 = vpop.f32.mrb[8].mxu1 }
 0x1e9   : > { %v1239_v13 = vpop.eup %1238  ;;  %v856_v14 = vadd.f32 1.0, %v1237_v10  ;;  %v701_v15 = vadd.f32 %v700_v12, %v1579_v49  ;;  %v702_v17 = vpop.f32.mrb[9].mxu1 }
 0x1ea   : > { %v1241_v19 = vpop.eup %1240  ;;  %1250 = vrcp.f32 %v855_v11  ;;  %v857_v20 = vadd.f32 1.0, %v1239_v13  ;;  %v703_v21 = vadd.f32 %v702_v17, %v1581_v50  ;;  %v704_v22 = vpop.f32.mrb[10].mxu1 }
 0x1eb   : > { %1252 = vrcp.f32 %v856_v14  ;;  %v858_v23 = vadd.f32 1.0, %v1241_v19  ;;  %v1093_v24 = vmul.f32 -1.442695, %v701_v15  ;;  %v705_v25 = vadd.f32 %v704_v22, %v1579_v49  ;;  %v706_v26 = vpop.f32.mrb[11].mxu1 }
 0x1ec   : > { %1254 = vrcp.f32 %v857_v20  ;;  %v1094_v27 = vmul.f32 -1.442695, %v703_v21  ;;  %v707_v28 = vadd.f32 %v706_v26, %v1581_v50 }
 0x1ed   : > { %1256 = vrcp.f32 %v858_v23  ;;  %v1095_v29 = vmul.f32 -1.442695, %v705_v25 }
 0x1ee   : > { %1258 = vpow2.f32 %v1093_v24  ;;  %v1096_v30 = vmul.f32 -1.442695, %v707_v28 }
 0x1ef   : > { %v1243_v31 = vpop.eup %1242  ;;  %1260 = vpow2.f32 %v1094_v27 }
 0x1f0   : > { %v1245_v32 = vpop.eup %1244  ;;  %v859_v33 = vadd.f32 1.0, %v1243_v31  ;;  %1262 = vpow2.f32 %v1095_v29  ;;  %v710_v34 = vpop.f32.mrb[12].mxu1 }
 0x1f1   : > { %v1247_v35 = vpop.eup %1246  ;;  %v860_v36 = vadd.f32 1.0, %v1245_v32  ;;  %1264 = vpow2.f32 %v1096_v30  ;;  %v711_v37 = vadd.f32 %v710_v34, %v1579_v49  ;;  %v712_v38 = vpop.f32.mrb[13].mxu1 }
 0x1f2   : > { %v1249_v39 = vpop.eup %1248  ;;  %1266 = vrcp.f32 %v859_v33  ;;  %v861_v40 = vadd.f32 1.0, %v1247_v35  ;;  %v713_v41 = vadd.f32 %v712_v38, %v1581_v50  ;;  %v714_v42 = vpop.f32.mrb[14].mxu1 }
 0x1f3   : > { %1268 = vrcp.f32 %v860_v36  ;;  %v862_v43 = vadd.f32 1.0, %v1249_v39  ;;  %v1097_v44 = vmul.f32 -1.442695, %v711_v37  ;;  %v715_v45 = vadd.f32 %v714_v42, %v1579_v49  ;;  %v716_v46 = vpop.f32.mrb[15].mxu1 }
 0x1f4   : > { %v1251_v47 = vpop.eup %1250  ;;  %1270 = vrcp.f32 %v861_v40  ;;  %v1098_v48 = vmul.f32 -1.442695, %v713_v41  ;;  %v717_v51 = vadd.f32 %v716_v46, %v1581_v50 }
 0x1f5   : > { %v1253_v16 = vpop.eup %1252  ;;  %951 = vst [vmem:[%s1601_s29] sm:$0xff] %v1251_v47  ;;  %1272 = vrcp.f32 %v862_v43  ;;  %v1099_v18 = vmul.f32 -1.442695, %v715_v45 }
 0x1f6   : > { %v1255_v52 = vpop.eup %1254  ;;  %952 = vst [vmem:[%s1601_s29 + $0x8] sm:$0xff] %v1253_v16  ;;  %1274 = vpow2.f32 %v1097_v44  ;;  %v1100_v53 = vmul.f32 -1.442695, %v717_v51 }
 0x1f7   : > { %v1257_v54 = vpop.eup %1256  ;;  %953 = vst [vmem:[%s1601_s29 + $0x10] sm:$0xff] %v1255_v52  ;;  %1276 = vpow2.f32 %v1098_v48 }
 0x1f8   : > { %v1259_v55 = vpop.eup %1258  ;;  %954 = vst [vmem:[%s1601_s29 + $0x18] sm:$0xff] %v1257_v54  ;;  %1278 = vpow2.f32 %v1099_v18  ;;  %v720_v56 = vpop.f32.mrb[16].mxu1 }
 0x1f9   : > { %v1261_v57 = vpop.eup %1260  ;;  %v863_v58 = vadd.f32 1.0, %v1259_v55  ;;  %1280 = vpow2.f32 %v1100_v53  ;;  %v721_v59 = vadd.f32 %v720_v56, %v1579_v49  ;;  %v722_v60 = vpop.f32.mrb[17].mxu1 }
 0x1fa   : > { %v1263_v61 = vpop.eup %1262  ;;  %v864_v62 = vadd.f32 1.0, %v1261_v57  ;;  %v723_v63 = vadd.f32 %v722_v60, %v1581_v50  ;;  %v724_v0 = vpop.f32.mrb[18].mxu1 }
 0x1fb   : > { %v1265_v1 = vpop.eup %1264  ;;  %1282 = vrcp.f32 %v863_v58  ;;  %v865_v2 = vadd.f32 1.0, %v1263_v61  ;;  %v1101_v3 = vmul.f32 -1.442695, %v721_v59  ;;  %v725_v4 = vadd.f32 %v724_v0, %v1579_v49  ;;  %v726_v5 = vpop.f32.mrb[19].mxu1 }
 0x1fc   : > { %v1267_v6 = vpop.eup %1266  ;;  %1284 = vrcp.f32 %v864_v62  ;;  %v866_v7 = vadd.f32 1.0, %v1265_v1  ;;  %v1102_v8 = vmul.f32 -1.442695, %v723_v63  ;;  %v727_v9 = vadd.f32 %v726_v5, %v1581_v50 }
 0x1fd   : > { %v1269_v10 = vpop.eup %1268  ;;  %955 = vst [vmem:[%s1601_s29 + $0x20] sm:$0xff] %v1267_v6  ;;  %1286 = vrcp.f32 %v865_v2  ;;  %v1103_v11 = vmul.f32 -1.442695, %v725_v4 }
 0x1fe   : > { %v1271_v12 = vpop.eup %1270  ;;  %956 = vst [vmem:[%s1601_s29 + $0x28] sm:$0xff] %v1269_v10  ;;  %1288 = vrcp.f32 %v866_v7  ;;  %v1104_v13 = vmul.f32 -1.442695, %v727_v9 }
 0x1ff   : > { %v1273_v14 = vpop.eup %1272  ;;  %957 = vst [vmem:[%s1601_s29 + $0x30] sm:$0xff] %v1271_v12  ;;  %1290 = vpow2.f32 %v1101_v3 }
 0x200   : > { %v1275_v15 = vpop.eup %1274  ;;  %958 = vst [vmem:[%s1601_s29 + $0x38] sm:$0xff] %v1273_v14  ;;  %1292 = vpow2.f32 %v1102_v8  ;;  %v730_v17 = vpop.f32.mrb[20].mxu1 }
 0x201   : > { %v1277_v19 = vpop.eup %1276  ;;  %v867_v20 = vadd.f32 1.0, %v1275_v15  ;;  %1294 = vpow2.f32 %v1103_v11  ;;  %v731_v21 = vadd.f32 %v730_v17, %v1579_v49  ;;  %v732_v22 = vpop.f32.mrb[21].mxu1 }
 0x202   : > { %v1279_v23 = vpop.eup %1278  ;;  %v868_v24 = vadd.f32 1.0, %v1277_v19  ;;  %1296 = vpow2.f32 %v1104_v13  ;;  %v733_v25 = vadd.f32 %v732_v22, %v1581_v50  ;;  %v734_v26 = vpop.f32.mrb[22].mxu1 }
 0x203   : > { %v1281_v27 = vpop.eup %1280  ;;  %1298 = vrcp.f32 %v867_v20  ;;  %v869_v28 = vadd.f32 1.0, %v1279_v23  ;;  %v1105_v29 = vmul.f32 -1.442695, %v731_v21  ;;  %v735_v30 = vadd.f32 %v734_v26, %v1579_v49  ;;  %v736_v31 = vpop.f32.mrb[23].mxu1 }
 0x204   : > { %1300 = vrcp.f32 %v868_v24  ;;  %v870_v32 = vadd.f32 1.0, %v1281_v27  ;;  %v1106_v33 = vmul.f32 -1.442695, %v733_v25  ;;  %v737_v34 = vadd.f32 %v736_v31, %v1581_v50 }
 0x205   : > { %v1283_v35 = vpop.eup %1282  ;;  %1302 = vrcp.f32 %v869_v28  ;;  %v1107_v36 = vmul.f32 -1.442695, %v735_v30 }
 0x206   : > { %v1285_v37 = vpop.eup %1284  ;;  %959 = vst [vmem:[%s1601_s29 + $0x40] sm:$0xff] %v1283_v35  ;;  %1304 = vrcp.f32 %v870_v32  ;;  %v1108_v38 = vmul.f32 -1.442695, %v737_v34 }
 0x207   : > { %v1287_v39 = vpop.eup %1286  ;;  %960 = vst [vmem:[%s1601_s29 + $0x48] sm:$0xff] %v1285_v37  ;;  %1306 = vpow2.f32 %v1105_v29 }
 0x208   : > { %v1289_v40 = vpop.eup %1288  ;;  %961 = vst [vmem:[%s1601_s29 + $0x50] sm:$0xff] %v1287_v39  ;;  %1308 = vpow2.f32 %v1106_v33  ;;  %v740_v41 = vpop.f32.mrb[24].mxu1 }
 0x209   : > { %v1291_v42 = vpop.eup %1290  ;;  %962 = vst [vmem:[%s1601_s29 + $0x58] sm:$0xff] %v1289_v40  ;;  %1310 = vpow2.f32 %v1107_v36  ;;  %v741_v43 = vadd.f32 %v740_v41, %v1579_v49  ;;  %v742_v44 = vpop.f32.mrb[25].mxu1 }
 0x20a   : > { %v1293_v45 = vpop.eup %1292  ;;  %v871_v46 = vadd.f32 1.0, %v1291_v42  ;;  %1312 = vpow2.f32 %v1108_v38  ;;  %v743_v47 = vadd.f32 %v742_v44, %v1581_v50  ;;  %v744_v48 = vpop.f32.mrb[26].mxu1 }
 0x20b   : > { %v1295_v51 = vpop.eup %1294  ;;  %v872_v16 = vadd.f32 1.0, %v1293_v45  ;;  %v745_v18 = vadd.f32 %v744_v48, %v1579_v49  ;;  %v746_v52 = vpop.f32.mrb[27].mxu1  ;;  %v1109_v55 = vmul.f32 -1.442695, %v741_v43 }
 0x20c   : > { %v1297_v53 = vpop.eup %1296  ;;  %1314 = vrcp.f32 %v871_v46  ;;  %v873_v54 = vadd.f32 1.0, %v1295_v51  ;;  %v747_v56 = vadd.f32 %v746_v52, %v1581_v50  ;;  %v1110_v59 = vmul.f32 -1.442695, %v743_v47 }
 0x20d   : > { %v1299_v57 = vpop.eup %1298  ;;  %1316 = vrcp.f32 %v872_v16  ;;  %v874_v58 = vadd.f32 1.0, %v1297_v53  ;;  %v1111_v61 = vmul.f32 -1.442695, %v745_v18 }
 0x20e   : > { %v1301_v60 = vpop.eup %1300  ;;  %963 = vst [vmem:[%s1601_s29 + $0x60] sm:$0xff] %v1299_v57  ;;  %1318 = vrcp.f32 %v873_v54  ;;  %v1112_v63 = vmul.f32 -1.442695, %v747_v56 }
 0x20f   : > { %v1303_v62 = vpop.eup %1302  ;;  %964 = vst [vmem:[%s1601_s29 + $0x68] sm:$0xff] %v1301_v60  ;;  %1320 = vrcp.f32 %v874_v58 }
 0x210   : > { %v1305_v0 = vpop.eup %1304  ;;  %965 = vst [vmem:[%s1601_s29 + $0x70] sm:$0xff] %v1303_v62  ;;  %1322 = vpow2.f32 %v1109_v55  ;;  %v750_v1 = vpop.f32.mrb[28].mxu1 }
 0x211   : > { %v1307_v2 = vpop.eup %1306  ;;  %966 = vst [vmem:[%s1601_s29 + $0x78] sm:$0xff] %v1305_v0  ;;  %1324 = vpow2.f32 %v1110_v59  ;;  %v751_v3 = vadd.f32 %v750_v1, %v1579_v49  ;;  %v752_v4 = vpop.f32.mrb[29].mxu1 }
 0x212   : > { %v1309_v5 = vpop.eup %1308  ;;  %v875_v6 = vadd.f32 1.0, %v1307_v2  ;;  %1326 = vpow2.f32 %v1111_v61  ;;  %v753_v7 = vadd.f32 %v752_v4, %v1581_v50  ;;  %v754_v8 = vpop.f32.mrb[30].mxu1 }
 0x213   : > { %v1311_v9 = vpop.eup %1310  ;;  %v876_v10 = vadd.f32 1.0, %v1309_v5  ;;  %1328 = vpow2.f32 %v1112_v63  ;;  %v755_v11 = vadd.f32 %v754_v8, %v1579_v49  ;;  %v756_v12 = vpop.f32.mrb[31].mxu1  ;;  %v1113_v15 = vmul.f32 -1.442695, %v751_v3 }
 0x214   : > { %v1313_v13 = vpop.eup %1312  ;;  %1330 = vrcp.f32 %v875_v6  ;;  %v877_v14 = vadd.f32 1.0, %v1311_v9  ;;  %v757_v17 = vadd.f32 %v756_v12, %v1581_v50  ;;  %v1114_v20 = vmul.f32 -1.442695, %v753_v7 }
 0x215   : > { %1332 = vrcp.f32 %v876_v10  ;;  %v878_v19 = vadd.f32 1.0, %v1313_v13  ;;  %v1115_v22 = vmul.f32 -1.442695, %v755_v11 }
 0x216   : > { %v1315_v21 = vpop.eup %1314  ;;  %1334 = vrcp.f32 %v877_v14  ;;  %v1116_v49 = vmul.f32 -1.442695, %v757_v17 }
 0x217   : > { %v1317_v23 = vpop.eup %1316  ;;  %967 = vst [vmem:[%s1601_s29 + $0x80] sm:$0xff] %v1315_v21  ;;  %1336 = vrcp.f32 %v878_v19 }
 0x218   : > { %v1319_v24 = vpop.eup %1318  ;;  %968 = vst [vmem:[%s1601_s29 + $0x88] sm:$0xff] %v1317_v23  ;;  %1338 = vpow2.f32 %v1113_v15 }
 0x219   : > { %v1321_v25 = vpop.eup %1320  ;;  %969 = vst [vmem:[%s1601_s29 + $0x90] sm:$0xff] %v1319_v24  ;;  %1340 = vpow2.f32 %v1114_v20 }
 0x21a   : > { %v1323_v26 = vpop.eup %1322  ;;  %970 = vst [vmem:[%s1601_s29 + $0x98] sm:$0xff] %v1321_v25  ;;  %1342 = vpow2.f32 %v1115_v22 }
 0x21b   : > { %v1325_v50 = vpop.eup %1324  ;;  %v879_v27 = vadd.f32 1.0, %v1323_v26  ;;  %1344 = vpow2.f32 %v1116_v49 }
 0x21c   : > { %v1327_v28 = vpop.eup %1326  ;;  %v880_v29 = vadd.f32 1.0, %v1325_v50 }
 0x21d   : > { %v1329_v30 = vpop.eup %1328  ;;  %1346 = vrcp.f32 %v879_v27  ;;  %v881_v31 = vadd.f32 1.0, %v1327_v28 }
 0x21e   : > { %v1331_v32 = vpop.eup %1330  ;;  %1348 = vrcp.f32 %v880_v29  ;;  %v882_v33 = vadd.f32 1.0, %v1329_v30 }
 0x21f   : > { %v1333_v34 = vpop.eup %1332  ;;  %971 = vst [vmem:[%s1601_s29 + $0xa0] sm:$0xff] %v1331_v32  ;;  %1350 = vrcp.f32 %v881_v31 }
 0x220   : > { %v1335_v35 = vpop.eup %1334  ;;  %972 = vst [vmem:[%s1601_s29 + $0xa8] sm:$0xff] %v1333_v34  ;;  %1352 = vrcp.f32 %v882_v33 }
 0x221   : > { %v1337_v36 = vpop.eup %1336  ;;  %973 = vst [vmem:[%s1601_s29 + $0xb0] sm:$0xff] %v1335_v35 }
 0x222   : > { %v1339_v37 = vpop.eup %1338  ;;  %974 = vst [vmem:[%s1601_s29 + $0xb8] sm:$0xff] %v1337_v36 }
 0x223   : > { %v1341_v38 = vpop.eup %1340  ;;  %v883_v39 = vadd.f32 1.0, %v1339_v37 }
 0x224   : > { %v1343_v40 = vpop.eup %1342  ;;  %v884_v41 = vadd.f32 1.0, %v1341_v38 }
 0x225   : > { %v1345_v42 = vpop.eup %1344  ;;  %1354 = vrcp.f32 %v883_v39  ;;  %v885_v43 = vadd.f32 1.0, %v1343_v40 }
 0x226   : > { %1356 = vrcp.f32 %v884_v41  ;;  %v886_v44 = vadd.f32 1.0, %v1345_v42 }
 0x227   : > { %v1347_v45 = vpop.eup %1346  ;;  %1358 = vrcp.f32 %v885_v43 }
 0x228   : > { %v1349_v46 = vpop.eup %1348  ;;  %975 = vst [vmem:[%s1601_s29 + $0xc0] sm:$0xff] %v1347_v45  ;;  %1360 = vrcp.f32 %v886_v44 }
 0x229   : > { %v1351_v47 = vpop.eup %1350  ;;  %976 = vst [vmem:[%s1601_s29 + $0xc8] sm:$0xff] %v1349_v46 }
 0x22a   : > { %v1353_v48 = vpop.eup %1352  ;;  %977 = vst [vmem:[%s1601_s29 + $0xd0] sm:$0xff] %v1351_v47 }
 0x22b   : > { %978 = vst [vmem:[%s1601_s29 + $0xd8] sm:$0xff] %v1353_v48 }
 0x22f   : > { %v1355_v51 = vpop.eup %1354 }
 0x230   : > { %v1357_v16 = vpop.eup %1356  ;;  %979 = vst [vmem:[%s1601_s29 + $0xe0] sm:$0xff] %v1355_v51 }
 0x231   : > { %v1359_v18 = vpop.eup %1358  ;;  %980 = vst [vmem:[%s1601_s29 + $0xe8] sm:$0xff] %v1357_v16 }
 0x232   : > { %v1361_v52 = vpop.eup %1360  ;;  %981 = vst [vmem:[%s1601_s29 + $0xf0] sm:$0xff] %v1359_v18 }
 0x233   : > { %982 = vst [vmem:[%s1601_s29 + $0xf8] sm:$0xff] %v1361_v52 }
 0x234 PF: > { %s15_s18 = sadd.s32 1, %s1368_s18  }
 0x235   : > { %p12_p4 = scmp.ge.s32.totalorder %s15_s18, 4  }
 0x237   :  { %14 = sbr.rel (!%p12_p4) target bundleno = 1 (0x1), region = 70 }

</bundles_post_ra>
